<compile_context>
chip_gen: v5e
topology: v5e:2x2
jax: 0.10.0
libtpu: 0.0.40
codegen_flags: <defaults>
</compile_context>

<pallas_src>
import functools
import math

import jax
import jax.numpy as jnp
from jax.experimental import pallas as pl
from jax.experimental.pallas import tpu as pltpu

N_TASKS = 6
_SUBLANE_ALIGN = 16  # bf16 activations pack 16 rows per sublane group


def critic_mlp_kernel(task_ref,                      # scalar prefetch (SMEM); used by index_maps only
                      s_ref, a_ref,                  # [TB, in_s], [TB, in_a]   bf16
                      w1s_ref, w1a_ref, b1_ref,      # fc1 split weights (bf16) + bias (f32)
                      w2_ref, b2_ref,                # fc2[task]  (bf16 / f32)
                      wq_ref, bq_ref,                # q[task]    (bf16 / f32)
                      out_ref):                      # [TB, 1] f32
    del task_ref  # only consumed by the BlockSpec index_maps

    # fc1 over the "concatenated" input, done as two dots (no concat needed).
    h1 = (jnp.dot(s_ref[...], w1s_ref[...], preferred_element_type=jnp.float32)
          + jnp.dot(a_ref[...], w1a_ref[...], preferred_element_type=jnp.float32))
    h1 = jnp.maximum(h1 + b1_ref[...], 0.0)          # f32 epilogue

    # fc2[task] + relu
    h2 = jnp.dot(h1.astype(w2_ref.dtype), w2_ref[...],
                 preferred_element_type=jnp.float32)
    h2 = jnp.maximum(h2 + b2_ref[...], 0.0)

    # q[task]
    q = jnp.dot(h2.astype(wq_ref.dtype), wq_ref[...],
                preferred_element_type=jnp.float32)
    out_ref[...] = (q + bq_ref[...]).astype(out_ref.dtype)


def _round_up(x, m):
    return ((x + m - 1) // m) * m


@functools.partial(jax.jit, static_argnames=("tile_b",))
def critic_forward(state, action, task, params, *, tile_b=256):
    """state: [B, input_dims] f32, action: [B, n_actions] f32,
    task: int32 scalar (traced -> no per-task recompiles)."""
    B, in_s = state.shape
    in_a = action.shape[1]

    w1s, w1a, b1 = params["fc1"]          # [in_s,fc1] bf16, [in_a,fc1] bf16, [1,fc1] f32
    w2_all, b2_all = params["fc2"]        # [T,fc1,fc2] bf16, [T,1,fc2] f32
    wq_all, bq_all = params["q"]          # [T,fc2,1]  bf16, [T,1,1]   f32
    fc1 = w1s.shape[1]
    fc2 = w2_all.shape[2]

    # Pad the batch to a sublane-aligned tile; padded rows are sliced off below
    # (no cross-row reductions, so zero rows are harmless).
    b_pad = _round_up(max(B, 1), _SUBLANE_ALIGN)
    tb = min(tile_b, b_pad)
    b_pad = _round_up(b_pad, tb)
    s_p = jnp.pad(state.astype(jnp.bfloat16), ((0, b_pad - B), (0, 0)))
    a_p = jnp.pad(action.astype(jnp.bfloat16), ((0, b_pad - B), (0, 0)))

    task_sp = jnp.asarray(task, dtype=jnp.int32).reshape((1,))

    grid_spec = pltpu.PrefetchScalarGridSpec(
        num_scalar_prefetch=1,
        grid=(b_pad // tb,),
        in_specs=[
            # Activations: tiled over the batch grid (double-buffered).
            pl.BlockSpec((tb, in_s), lambda i, t: (i, 0)),
            pl.BlockSpec((tb, in_a), lambda i, t: (i, 0)),
            # fc1 weights/bias: constant index_map -> VMEM-resident, one DMA.
            pl.BlockSpec((in_s, fc1), lambda i, t: (0, 0)),
            pl.BlockSpec((in_a, fc1), lambda i, t: (0, 0)),
            pl.BlockSpec((1, fc1), lambda i, t: (0, 0)),
            # Per-task heads: leading (squeezed) axis selected via the scalar
            # prefetch ref -> only the chosen task's slice is DMA'd.
            pl.BlockSpec((None, fc1, fc2), lambda i, t: (t[0], 0, 0)),
            pl.BlockSpec((None, 1, fc2), lambda i, t: (t[0], 0, 0)),
            pl.BlockSpec((None, fc2, 1), lambda i, t: (t[0], 0, 0)),
            pl.BlockSpec((None, 1, 1), lambda i, t: (t[0], 0, 0)),
        ],
        out_specs=pl.BlockSpec((tb, 1), lambda i, t: (i, 0)),
    )

    q_pad = pl.pallas_call(
        critic_mlp_kernel,
        out_shape=jax.ShapeDtypeStruct((b_pad, 1), jnp.float32),
        grid_spec=grid_spec,
        compiler_params=pltpu.CompilerParams(
            dimension_semantics=("parallel",)),   # megacore batch split on v7x
    )(task_sp, s_p, a_p, w1s, w1a, b1, w2_all, b2_all, wq_all, bq_all)

    return q_pad[:B]


def _uniform(key, shape, fan_in):
    """torch.nn.Linear default init: U(-1/sqrt(fan_in), 1/sqrt(fan_in))."""
    bound = 1.0 / math.sqrt(fan_in)
    return jax.random.uniform(key, shape, jnp.float32, -bound, bound)


def make_params(key, input_dims, n_actions, fc1_dims, fc2_dims, n_tasks=N_TASKS):
    """Weights pre-transposed to [in, out]; fc1 weight pre-split into its
    state / action rows; per-task heads stacked along a leading task axis.
    Weights are stored in bf16 (f32 accumulation in-kernel), biases in f32."""
    in_total = input_dims + n_actions
    k = jax.random.split(key, 2 + 4 * n_tasks)
    w1 = _uniform(k[0], (in_total, fc1_dims), in_total)
    b1 = _uniform(k[1], (1, fc1_dims), in_total)
    w2 = jnp.stack([_uniform(k[2 + i], (fc1_dims, fc2_dims), fc1_dims)
                    for i in range(n_tasks)])
    b2 = jnp.stack([_uniform(k[2 + n_tasks + i], (1, fc2_dims), fc1_dims)
                    for i in range(n_tasks)])
    wq = jnp.stack([_uniform(k[2 + 2 * n_tasks + i], (fc2_dims, 1), fc2_dims)
                    for i in range(n_tasks)])
    bq = jnp.stack([_uniform(k[2 + 3 * n_tasks + i], (1, 1), fc2_dims)
                    for i in range(n_tasks)])
    return {
        "fc1": (w1[:input_dims].astype(jnp.bfloat16),   # state rows of W1
                w1[input_dims:].astype(jnp.bfloat16),   # action rows of W1
                b1),
        "fc2": (w2.astype(jnp.bfloat16), b2),
        "q": (wq.astype(jnp.bfloat16), bq),
    }
    # TODO(synk): optimizer (Adam) and checkpoint save/load from the PyTorch
    # module are host-side concerns, not part of the forward kernel.


if __name__ == "__main__":
    # Small shapes consistent with the module's forward (lane-dense hidden).
    B = 2
    input_dims = 8
    n_actions = 4
    fc1_dims = 128
    fc2_dims = 128

    key = jax.random.PRNGKey(0)
    kp, ks, ka = jax.random.split(key, 3)

    params = make_params(kp, input_dims, n_actions, fc1_dims, fc2_dims)
    state = jax.random.normal(ks, (B, input_dims), jnp.float32)
    action = jax.random.normal(ka, (B, n_actions), jnp.float32)

    task = jnp.int32(3)  # dynamic task index: one compiled kernel for all tasks

    q = critic_forward(state, action, task, params)
    q = jax.block_until_ready(q)

    # Pure-JAX reference with identical dtype handling (bf16 weights/acts,
    # f32 accumulation and f32 epilogue).
    w1s, w1a, b1 = params["fc1"]
    w2_all, b2_all = params["fc2"]
    wq_all, bq_all = params["q"]
    t = int(task)
    s16 = state.astype(jnp.bfloat16)
    a16 = action.astype(jnp.bfloat16)
    h1 = jnp.maximum(
        jnp.dot(s16, w1s, preferred_element_type=jnp.float32)
        + jnp.dot(a16, w1a, preferred_element_type=jnp.float32) + b1, 0.0)
    h2 = jnp.maximum(
        jnp.dot(h1.astype(jnp.bfloat16), w2_all[t],
                preferred_element_type=jnp.float32) + b2_all[t], 0.0)
    q_ref = jnp.dot(h2.astype(jnp.bfloat16), wq_all[t],
                    preferred_element_type=jnp.float32) + bq_all[t]

    assert q.shape == (B, 1)
    assert jnp.allclose(q, q_ref, atol=1e-4, rtol=1e-4)

    # Exercise a second task value: same executable, no retrace/recompile.
    q2 = jax.block_until_ready(critic_forward(state, action, jnp.int32(0), params))
    assert q2.shape == (B, 1)

    print("KERNEL_OK")
</pallas_src>

<mosaic_0001>
module attributes {stable_mosaic.version = 11 : i64} {
  func.func @critic_mlp_kernel(%arg0: i32, %arg1: memref<1xi32, #tpu.memory_space<smem>>, %arg2: memref<16x8xbf16, #tpu.memory_space<vmem>>, %arg3: memref<16x4xbf16, #tpu.memory_space<vmem>>, %arg4: memref<8x128xbf16, #tpu.memory_space<vmem>>, %arg5: memref<4x128xbf16, #tpu.memory_space<vmem>>, %arg6: memref<1x128xf32, #tpu.memory_space<vmem>>, %arg7: memref<1x128x128xbf16, #tpu.memory_space<vmem>>, %arg8: memref<1x1x128xf32, #tpu.memory_space<vmem>>, %arg9: memref<1x128x1xbf16, #tpu.memory_space<vmem>>, %arg10: memref<1x1x1xf32, #tpu.memory_space<vmem>>, %arg11: memref<16x1xf32, #tpu.memory_space<vmem>>) attributes {dimension_semantics = [#tpu.dimension_semantics<parallel>], iteration_bounds = array<i64: 1>, scalar_prefetch = 1 : i64, scratch_operands = 0 : i64, tpu.core_type = #tpu.core_type<tc>, window_params = [{transform_indices = @transform_0, window_bounds = array<i64: 16, 8>}, {transform_indices = @transform_1, window_bounds = array<i64: 16, 4>}, {pipeline_mode = #tpu.pipeline_mode<synchronous>, transform_indices = @transform_2, window_bounds = array<i64: 8, 128>}, {pipeline_mode = #tpu.pipeline_mode<synchronous>, transform_indices = @transform_3, window_bounds = array<i64: 4, 128>}, {pipeline_mode = #tpu.pipeline_mode<synchronous>, transform_indices = @transform_4, window_bounds = array<i64: 1, 128>}, {transform_indices = @transform_5, window_bounds = array<i64: 1, 128, 128>}, {transform_indices = @transform_6, window_bounds = array<i64: 1, 1, 128>}, {transform_indices = @transform_7, window_bounds = array<i64: 1, 128, 1>}, {transform_indices = @transform_8, window_bounds = array<i64: 1, 1, 1>}, {transform_indices = @transform_9, window_bounds = array<i64: 16, 1>}]} {
    %c0 = arith.constant 0 : index
    %c0_0 = arith.constant 0 : index
    %0 = vector.load %arg2[%c0, %c0_0] : memref<16x8xbf16, #tpu.memory_space<vmem>>, vector<16x8xbf16>
    %c0_1 = arith.constant 0 : index
    %c0_2 = arith.constant 0 : index
    %1 = vector.load %arg4[%c0_1, %c0_2] : memref<8x128xbf16, #tpu.memory_space<vmem>>, vector<8x128xbf16>
    %cst = arith.constant dense<0.000000e+00> : vector<16x128xf32>
    %2 = tpu.matmul %0, %1, %cst {dimension_numbers = #tpu.dot_dimension_numbers<[1], [0], [0], [1], [0, 0, 1, 1], [], []>} : vector<16x8xbf16>, vector<8x128xbf16>, vector<16x128xf32> -> vector<16x128xf32>
    %c0_3 = arith.constant 0 : index
    %c0_4 = arith.constant 0 : index
    %3 = vector.load %arg3[%c0_3, %c0_4] : memref<16x4xbf16, #tpu.memory_space<vmem>>, vector<16x4xbf16>
    %c0_5 = arith.constant 0 : index
    %c0_6 = arith.constant 0 : index
    %4 = vector.load %arg5[%c0_5, %c0_6] : memref<4x128xbf16, #tpu.memory_space<vmem>>, vector<4x128xbf16>
    %cst_7 = arith.constant dense<0.000000e+00> : vector<16x128xf32>
    %5 = tpu.matmul %3, %4, %cst_7 {dimension_numbers = #tpu.dot_dimension_numbers<[1], [0], [0], [1], [0, 0, 1, 1], [], []>} : vector<16x4xbf16>, vector<4x128xbf16>, vector<16x128xf32> -> vector<16x128xf32>
    %6 = arith.addf %2, %5 : vector<16x128xf32>
    %c0_8 = arith.constant 0 : index
    %c0_9 = arith.constant 0 : index
    %7 = vector.load %arg6[%c0_8, %c0_9] : memref<1x128xf32, #tpu.memory_space<vmem>>, vector<1x128xf32>
    %8 = vector.broadcast %7 : vector<1x128xf32> to vector<16x128xf32>
    %9 = arith.addf %6, %8 : vector<16x128xf32>
    %cst_10 = arith.constant 0.000000e+00 : f32
    %10 = vector.broadcast %cst_10 : f32 to vector<16x128xf32>
    %11 = arith.maximumf %9, %10 : vector<16x128xf32>
    %12 = arith.truncf %11 : vector<16x128xf32> to vector<16x128xbf16>
    %c0_11 = arith.constant 0 : index
    %c0_12 = arith.constant 0 : index
    %c0_13 = arith.constant 0 : index
    %13 = vector.load %arg7[%c0_11, %c0_12, %c0_13] : memref<1x128x128xbf16, #tpu.memory_space<vmem>>, vector<1x128x128xbf16>
    %14 = vector.shape_cast %13 : vector<1x128x128xbf16> to vector<128x128xbf16>
    %cst_14 = arith.constant dense<0.000000e+00> : vector<16x128xf32>
    %15 = tpu.matmul %12, %14, %cst_14 {dimension_numbers = #tpu.dot_dimension_numbers<[1], [0], [0], [1], [0, 0, 1, 1], [], []>} : vector<16x128xbf16>, vector<128x128xbf16>, vector<16x128xf32> -> vector<16x128xf32>
    %c0_15 = arith.constant 0 : index
    %c0_16 = arith.constant 0 : index
    %c0_17 = arith.constant 0 : index
    %16 = vector.load %arg8[%c0_15, %c0_16, %c0_17] : memref<1x1x128xf32, #tpu.memory_space<vmem>>, vector<1x1x128xf32>
    %17 = vector.shape_cast %16 : vector<1x1x128xf32> to vector<1x128xf32>
    %18 = vector.broadcast %17 : vector<1x128xf32> to vector<16x128xf32>
    %19 = arith.addf %15, %18 : vector<16x128xf32>
    %cst_18 = arith.constant 0.000000e+00 : f32
    %20 = vector.broadcast %cst_18 : f32 to vector<16x128xf32>
    %21 = arith.maximumf %19, %20 : vector<16x128xf32>
    %22 = arith.truncf %21 : vector<16x128xf32> to vector<16x128xbf16>
    %c0_19 = arith.constant 0 : index
    %c0_20 = arith.constant 0 : index
    %c0_21 = arith.constant 0 : index
    %23 = vector.load %arg9[%c0_19, %c0_20, %c0_21] : memref<1x128x1xbf16, #tpu.memory_space<vmem>>, vector<1x128x1xbf16>
    %24 = vector.shape_cast %23 : vector<1x128x1xbf16> to vector<128x1xbf16>
    %cst_22 = arith.constant dense<0.000000e+00> : vector<16x1xf32>
    %25 = tpu.matmul %22, %24, %cst_22 {dimension_numbers = #tpu.dot_dimension_numbers<[1], [0], [0], [1], [0, 0, 1, 1], [], []>} : vector<16x128xbf16>, vector<128x1xbf16>, vector<16x1xf32> -> vector<16x1xf32>
    %c0_23 = arith.constant 0 : index
    %c0_24 = arith.constant 0 : index
    %c0_25 = arith.constant 0 : index
    %26 = vector.load %arg10[%c0_23, %c0_24, %c0_25] : memref<1x1x1xf32, #tpu.memory_space<vmem>>, vector<1x1x1xf32>
    %27 = vector.shape_cast %26 : vector<1x1x1xf32> to vector<1x1xf32>
    %28 = vector.broadcast %27 : vector<1x1xf32> to vector<16x1xf32>
    %29 = arith.addf %25, %28 : vector<16x1xf32>
    %c0_26 = arith.constant 0 : index
    %c0_27 = arith.constant 0 : index
    %30 = vector.load %arg11[%c0_26, %c0_27] : memref<16x1xf32, #tpu.memory_space<vmem>>, vector<16x1xf32>
    tpu.vector_store %arg11[%c0_26, %c0_27], %29 {strides = array<i32>} : memref<16x1xf32, #tpu.memory_space<vmem>>, vector<16x1xf32>,
    return
  }
  func.func @transform_0(%arg0: i32, %arg1: memref<1xi32, #tpu.memory_space<smem>>) -> (i32, i32) {
    %c0_i32 = arith.constant 0 : i32
    %c0_i32_0 = arith.constant 0 : i32
    return %arg0, %c0_i32 : i32, i32
  }
  func.func @transform_1(%arg0: i32, %arg1: memref<1xi32, #tpu.memory_space<smem>>) -> (i32, i32) {
    %c0_i32 = arith.constant 0 : i32
    %c0_i32_0 = arith.constant 0 : i32
    return %arg0, %c0_i32 : i32, i32
  }
  func.func @transform_2(%arg0: i32, %arg1: memref<1xi32, #tpu.memory_space<smem>>) -> (i32, i32) {
    %c0_i32 = arith.constant 0 : i32
    %c0_i32_0 = arith.constant 0 : i32
    %c0_i32_1 = arith.constant 0 : i32
    return %c0_i32, %c0_i32_0 : i32, i32
  }
  func.func @transform_3(%arg0: i32, %arg1: memref<1xi32, #tpu.memory_space<smem>>) -> (i32, i32) {
    %c0_i32 = arith.constant 0 : i32
    %c0_i32_0 = arith.constant 0 : i32
    %c0_i32_1 = arith.constant 0 : i32
    return %c0_i32, %c0_i32_0 : i32, i32
  }
  func.func @transform_4(%arg0: i32, %arg1: memref<1xi32, #tpu.memory_space<smem>>) -> (i32, i32) {
    %c0_i32 = arith.constant 0 : i32
    %c0_i32_0 = arith.constant 0 : i32
    %c0_i32_1 = arith.constant 0 : i32
    return %c0_i32, %c0_i32_0 : i32, i32
  }
  func.func @transform_5(%arg0: i32, %arg1: memref<1xi32, #tpu.memory_space<smem>>) -> (i32, i32, i32) {
    %c0 = arith.constant 0 : index
    %0 = memref.load %arg1[%c0] : memref<1xi32, #tpu.memory_space<smem>>
    %c0_i32 = arith.constant 0 : i32
    %c0_i32_0 = arith.constant 0 : i32
    %c0_i32_1 = arith.constant 0 : i32
    return %0, %c0_i32, %c0_i32_0 : i32, i32, i32
  }
  func.func @transform_6(%arg0: i32, %arg1: memref<1xi32, #tpu.memory_space<smem>>) -> (i32, i32, i32) {
    %c0 = arith.constant 0 : index
    %0 = memref.load %arg1[%c0] : memref<1xi32, #tpu.memory_space<smem>>
    %c0_i32 = arith.constant 0 : i32
    %c0_i32_0 = arith.constant 0 : i32
    %c0_i32_1 = arith.constant 0 : i32
    return %0, %c0_i32, %c0_i32_0 : i32, i32, i32
  }
  func.func @transform_7(%arg0: i32, %arg1: memref<1xi32, #tpu.memory_space<smem>>) -> (i32, i32, i32) {
    %c0 = arith.constant 0 : index
    %0 = memref.load %arg1[%c0] : memref<1xi32, #tpu.memory_space<smem>>
    %c0_i32 = arith.constant 0 : i32
    %c0_i32_0 = arith.constant 0 : i32
    %c0_i32_1 = arith.constant 0 : i32
    return %0, %c0_i32, %c0_i32_0 : i32, i32, i32
  }
  func.func @transform_8(%arg0: i32, %arg1: memref<1xi32, #tpu.memory_space<smem>>) -> (i32, i32, i32) {
    %c0 = arith.constant 0 : index
    %0 = memref.load %arg1[%c0] : memref<1xi32, #tpu.memory_space<smem>>
    %c0_i32 = arith.constant 0 : i32
    %c0_i32_0 = arith.constant 0 : i32
    %c0_i32_1 = arith.constant 0 : i32
    return %0, %c0_i32, %c0_i32_0 : i32, i32, i32
  }
  func.func @transform_9(%arg0: i32, %arg1: memref<1xi32, #tpu.memory_space<smem>>) -> (i32, i32) {
    %c0_i32 = arith.constant 0 : i32
    %c0_i32_0 = arith.constant 0 : i32
    return %arg0, %c0_i32 : i32, i32
  }
}

</mosaic_0001>

<bundles_post_ra>
// kernel: critic_forward.1
= control target key start
LH: loop header
LB: loop body
LE: loop exit
PB: predicated region body
PF: predicated region fallthrough
CT: control target
= control target key end

     0   :  { %vm118_vm0 = vcmask 1041408   ;;  %vm145_vm1 = vcmask 1043456   ;;  %vm114_vm2 = vcmask 31744   ;;  %vm141_vm3 = vcmask 64512   ;;  %s569_s4 = inlined_call_operand.vmem [shape: bf16[4,128], index: 4, kind: input, shape index: {}]   ;;  %s570_s3 = inlined_call_operand.vmem [shape: bf16[8,128], index: 3, kind: input, shape index: {}]   ;;  %s571_s2 = inlined_call_operand.vmem [shape: bf16[16,4], index: 2, kind: input, shape index: {}]   ;;  %s572_s1 = inlined_call_operand.vmem [shape: bf16[16,8], index: 1, kind: input, shape index: {}]   ;;  %s573_s0 = inlined_call_operand.<no memory space> [shape: s32[1], index: 0, kind: input, shape index: {}]   ;;  %s574_s6 = inlined_call_operand.vmem [shape: bf16[6,128,128], index: 6, kind: input, shape index: {}]   ;;  %s575_s5 = inlined_call_operand.vmem [shape: f32[1,128], index: 5, kind: input, shape index: {}]   ;;  %s576_s7 = inlined_call_operand.vmem [shape: f32[6,1,128], index: 7, kind: input, shape index: {}]   ;;  %s577_s8 = inlined_call_operand.vmem [shape: bf16[6,128,1], index: 8, kind: input, shape index: {}]   ;;  %s578_s9 = inlined_call_operand.vmem [shape: f32[6,1,1], index: 9, kind: input, shape index: {}]   ;;  %s579_s10 = inlined_call_operand.vmem [shape: f32[16,1], index: 10, kind: output, shape index: {}]  }
   0x1   :  { %v108_v0 = vld [vmem:[%s569_s4] sm:$0x3]  ;;  %p79_p0 = scmp.lt.s32.totalorder %s573_s0, 5  ;;  %vm339_vm4 = vcmask 7168  }
   0x2   :  { %v105_v1 = vld [vmem:[%s570_s3] sm:$0xf]  ;;  %v120_v2 = vsel %vm118_vm0, %v108_v0, 0 }
   0x3   :  { %v147_v3 = vsel %vm145_vm1, %v105_v1, 0  ;;  %v445_v4 = vld [vmem:[%s571_s2] sm:$0xff]  ;;  %129 = vmatpush.bf16.msra.mxu0 %v120_v2  ;;  %s581_s0 = smov (!%p79_p0, %s573_s0), 5 }
   0x4   :  { %v444_v5 = vld [vmem:[%s572_s1] sm:$0xff]  ;;  %156 = vmatpush.bf16.msra.mxu1 %v147_v3  ;;  %s442_s23 = sshll.u32 %s581_s0, 6  ;;  %s88_s27 = scalar_lea.vmem %s576_s7, %s581_s0 }
   0x5   :  { %s83_s25 = scalar_lea.vmem %s574_s6, %s442_s23  ;;  %s95_s29 = scalar_lea.vmem %s577_s8, %s442_s23  ;;  %v462_v21 = vld [vmem:[%s575_s5] ss:$0 sm:$0xff] }
   0x6   :  { %372 = vmatmul.msk.bf16.vlgmr.msra.gmra.mxu0 %vm114_vm2, %v445_v4  ;;  %v453_v6 = vld [vmem:[%s83_s25 + $0x38] sm:$0xff]  ;;  %v452_v7 = vld [vmem:[%s83_s25 + $0x30] sm:$0xff]  ;;  %v451_v8 = vld [vmem:[%s83_s25 + $0x28] sm:$0xff]  ;;  %s100_s13 = scalar_lea.vmem %s578_s9, %s581_s0 }
   0x7   :  { %377 = vmatmul.msk.bf16.vlgmr.msra.gmra.mxu1 %vm141_vm3, %v444_v5  ;;  %240 = vmatpush.bf16.msra.mxu2 %v453_v6  ;;  %v450_v9 = vld [vmem:[%s83_s25 + $0x20] sm:$0xff]  ;;  %v449_v10 = vld [vmem:[%s83_s25 + $0x18] sm:$0xff]  ;;  %v448_v11 = vld [vmem:[%s83_s25 + $0x10] sm:$0xff] }
   0x8   :  { %v447_v12 = vld [vmem:[%s83_s25 + $0x8] sm:$0xff]  ;;  %v446_v13 = vld [vmem:[%s83_s25] sm:$0xff]  ;;  %v461_v14 = vld [vmem:[%s95_s29 + $0x38] sm:$0xff] }
   0x9   :  { %325 = vmatpush.bf16.msra.mxu3 %v461_v14  ;;  %v460_v15 = vld [vmem:[%s95_s29 + $0x30] sm:$0xff]  ;;  %v459_v16 = vld [vmem:[%s95_s29 + $0x28] sm:$0xff]  ;;  %v458_v17 = vld [vmem:[%s95_s29 + $0x20] sm:$0xff] }
   0xa   :  { %v457_v30 = vld [vmem:[%s95_s29 + $0x18] sm:$0xff]  ;;  %v456_v31 = vld [vmem:[%s95_s29 + $0x10] sm:$0xff]  ;;  %v455_v32 = vld [vmem:[%s95_s29 + $0x8] sm:$0xff] }
   0xb   :  { %241 = vmatpush.bf16.msra.mxu2 %v452_v7  ;;  %v454_v33 = vld [vmem:[%s95_s29] sm:$0xff] }
   0xc   :  { %v463_v35 = vld [vmem:[%s88_s27] ss:$0 sm:$0xff] }
   0xd   :  { %326 = vmatpush.bf16.msra.mxu3 %v460_v15  ;;  %v464_v42 = vld [vmem:[%s100_s13] ss:$0 sm:$0xff] }
   0xf   :  { %242 = vmatpush.bf16.msra.mxu2 %v451_v8 }
  0x11   :  { %327 = vmatpush.bf16.msra.mxu3 %v459_v16 }
  0x13   :  { %243 = vmatpush.bf16.msra.mxu2 %v450_v9 }
  0x15   :  { %328 = vmatpush.bf16.msra.mxu3 %v458_v17 }
  0x17   :  { %244 = vmatpush.bf16.msra.mxu2 %v449_v10 }
  0x19   :  { %329 = vmatpush.bf16.msra.mxu3 %v457_v30 }
  0x1b   :  { %245 = vmatpush.bf16.msra.mxu2 %v448_v11 }
  0x1d   :  { %330 = vmatpush.bf16.msra.mxu3 %v456_v31 }
  0x1f   :  { %246 = vmatpush.bf16.msra.mxu2 %v447_v12 }
  0x21   :  { %331 = vmatpush.bf16.msra.mxu3 %v455_v32 }
  0x23   :  { %247 = vmatpush.bf16.msra.mxu2 %v446_v13 }
  0x25   :  { %332 = vmatpush.bf16.msra.mxu3 %v454_v33 }
  0x83   :  { %v131_v18 = vpop.f32.mrf.mxu0 }
  0x84   :  { %v158_v19 = vpop.f32.mrf.mxu1 }
  0x85   :  { %v159_v20 = vadd.f32 %v158_v19, %v131_v18 }
  0x87   :  { %v167_v24 = vadd.f32 %v462_v21, %v159_v20 }
  0x89   :  { %v169_v27 = vmax.f32 %v167_v24, 0.0 }
  0x8b   :  { %v133_v22 = vpop.f32.mrf.mxu0 }
  0x8c   :  { %v160_v23 = vpop.f32.mrf.mxu1 }
  0x8d   :  { %v161_v25 = vadd.f32 %v160_v23, %v133_v22 }
  0x8f   :  { %v168_v26 = vadd.f32 %v462_v21, %v161_v25 }
  0x91   :  { %v170_v28 = vmax.f32 %v168_v26, 0.0 }
  0x93   :  { %v171_v29 = vpack.c.bf16 %v170_v28, %v169_v27 }
  0x95   :  { %248 = vmatmul.bf16.vlgmr.msra.gmra.mxu2 %v171_v29 }
 0x118   :  { %v249_v34 = vpop.f32.mrf.mxu2 }
 0x119   :  { %v250_v36 = vadd.f32 %v463_v35, %v249_v34 }
 0x11b   :  { %v254_v39 = vmax.f32 %v250_v36, 0.0 }
 0x120   :  { %v251_v37 = vpop.f32.mrf.mxu2 }
 0x121   :  { %v252_v38 = vadd.f32 %v463_v35, %v251_v37 }
 0x123   :  { %v255_v40 = vmax.f32 %v252_v38, 0.0 }
 0x125   :  { %v256_v41 = vpack.c.bf16 %v255_v40, %v254_v39 }
 0x127   :  { %333 = vmatmul.bf16.vlgmr.msra.gmra.mxu3 %v256_v41 }
 0x1aa   :  { %v334_v43 = vpop.f32.mrf.mxu3 }
 0x1ab   :  { %v335_v44 = vadd.f32 %v464_v42, %v334_v43 }
 0x1ad   :  { %340 = vst.msk [vmem:[%s579_s10] sm:$0xff] %vm339_vm4, %v335_v44 }
 0x1b2   :  { %v336_v45 = vpop.f32.mrf.mxu3 }
 0x1b3   :  { %v337_v46 = vadd.f32 %v464_v42, %v336_v45 }
 0x1b5   :  { %341 = vst.msk [vmem:[%s579_s10 + $0x8] sm:$0xff] %vm339_vm4, %v337_v46 }

</bundles_post_ra>
